<compile_context>
chip_gen: v7x
topology: tpu7x:2x2x1
jax: 0.10.0
libtpu: 0.0.40
codegen_flags: <defaults>
</compile_context>

<pallas_src>
import functools

import jax
import jax.numpy as jnp
from jax.experimental import pallas as pl
from jax.experimental.pallas import tpu as pltpu


def _cmc6_kernel(trow_ref, tcol_blk_ref, tcol_full_ref, m12_ref, out_ref,
                 cr_ref, ct_ref, ct_t_ref, c2_ref, acc_ref, *, margin):
    i = pl.program_id(0)
    n = trow_ref.shape[1]
    two_d = m12_ref.shape[1]
    d = two_d // 2
    tm = tcol_blk_ref.shape[0]
    inv_nn = 1.0 / float(n * n)

    # ---- step 0: per-sample class centers, computed once, kept in scratch ----
    @pl.when(i == 0)
    def _init():
        trow = trow_ref[...]                                    # (1, n) int32
        tcol = tcol_full_ref[...]                               # (n, 1) int32
        mask = (tcol == trow).astype(jnp.float32)               # (n, n)
        inv_cnt = 1.0 / jnp.sum(mask, axis=1, keepdims=True)    # (n, 1) hoisted
        m12 = m12_ref[...].astype(jnp.float32)                  # native dtype DMA, VPU cast
        # one wide MXU matmul for BOTH modalities ([m1 || m2] on the lane axis)
        crt = jnp.dot(mask, m12, preferred_element_type=jnp.float32) * inv_cnt
        cr = crt[:, :d]                                         # cR (n, d)
        ct = crt[:, d:]                                         # cT (n, d)
        cr_ref[...] = cr
        ct_ref[...] = ct
        c = (cr + ct) * 0.5                                     # centers (n, d)
        c_t = jnp.transpose(c)                                  # transpose ONCE -> (d, n)
        ct_t_ref[...] = c_t
        c2_ref[...] = jnp.sum(c_t * c_t, axis=0, keepdims=True)  # ||c_j||^2 (1, n)
        acc_ref[0, 0] = jnp.float32(0.0)

    # ---- every step: distances / loss for one row block vs all columns ----
    row0 = pl.multiple_of(i * tm, 8) if tm % 8 == 0 else i * tm
    trow = trow_ref[...]                                        # (1, n)
    tcol_b = tcol_blk_ref[...]                                  # (tm, 1)
    mask_b = (tcol_b == trow).astype(jnp.float32)               # (tm, n)

    cr_b = cr_ref[pl.ds(row0, tm), :]                           # (tm, d)
    ct_b = ct_ref[pl.ds(row0, tm), :]                           # (tm, d)
    lhs = jnp.concatenate([cr_b, ct_b], axis=0)                 # stacked LHS (2*tm, d)
    lhs2 = jnp.sum(lhs * lhs, axis=1, keepdims=True)            # (2*tm, 1)

    # single MXU matmul per step against the pre-transposed, resident centers
    gram = jnp.dot(lhs, ct_t_ref[...], preferred_element_type=jnp.float32)  # (2tm, n)
    d2 = jnp.maximum(lhs2 + c2_ref[...] - 2.0 * gram, 1e-12)    # == torch clamp(min=1e-12)
    dist = jnp.sqrt(d2)                                         # Euclidean distance
    dd = jnp.sqrt(dist + 1e-10)                                 # sqrt(dist + 1e-10) (per spec)
    hinge = jnp.maximum(margin - dd, 0.0)
    hinge2 = hinge * hinge

    # positive term uses the clamped squared distance directly (= dist^2)
    pos = mask_b * (d2[:tm, :] + d2[tm:, :])
    neg = (1.0 - mask_b) * (hinge2[:tm, :] + hinge2[tm:, :])
    block_sum = jnp.sum(pos + neg) * inv_nn                     # contribution to loss1+loss2

    acc_ref[0, 0] += block_sum
    out_ref[0, 0] = acc_ref[0, 0]


def _pick_block_rows(n, requested=None):
    if requested is not None:
        if requested == n or (n % requested == 0 and requested % 8 == 0):
            return int(requested)
    if n % 8 != 0:
        return n                      # single block; shapes stay full-array
    best, t = 8, 16
    while t <= min(n, 256):
        if n % t == 0:
            best = t
        t += 8
    return best


def cross_modal_contrastive_loss6(modal1, modal2, targets, *, margin=0.5,
                                  block_rows=None):
    """Returns (loss1 + loss2, 0), matching the PyTorch module's forward."""
    n, d = modal1.shape
    tm = _pick_block_rows(n, block_rows)
    grid = (n // tm,)

    # [m1 || m2] so the per-class sums of both modalities use ONE wide matmul.
    # No dtype casts here: the kernel DMAs the native dtype and casts on-chip.
    m12 = jnp.concatenate([modal1, modal2], axis=1)

    t_i32 = targets.astype(jnp.int32)
    trow = t_i32.reshape(1, n)
    tcol = t_i32.reshape(n, 1)   # pads to one (8,128) int32 tile in VMEM (tiny)

    kernel = functools.partial(_cmc6_kernel, margin=float(margin))

    out = pl.pallas_call(
        kernel,
        grid=grid,
        in_specs=[
            pl.BlockSpec((1, n), lambda i: (0, 0)),       # targets as row (resident)
            pl.BlockSpec((tm, 1), lambda i: (i, 0)),      # row-block of targets-as-column
            pl.BlockSpec((n, 1), lambda i: (0, 0)),       # full targets-as-column (step 0)
            pl.BlockSpec((n, 2 * d), lambda i: (0, 0)),   # [modal1 || modal2] (resident)
        ],
        out_specs=pl.BlockSpec((1, 1), lambda i: (0, 0),
                               memory_space=pltpu.MemorySpace.SMEM),
        out_shape=jax.ShapeDtypeStruct((1, 1), jnp.float32),
        scratch_shapes=[
            pltpu.VMEM((n, d), jnp.float32),   # cR (all samples)
            pltpu.VMEM((n, d), jnp.float32),   # cT (all samples)
            pltpu.VMEM((d, n), jnp.float32),   # centers, pre-transposed matmul RHS
            pltpu.VMEM((1, n), jnp.float32),   # ||center_j||^2 row
            pltpu.SMEM((1, 1), jnp.float32),   # scalar loss accumulator
        ],
        compiler_params=pltpu.CompilerParams(
            # step-0 scratch is carried across row blocks -> must stay sequential
            dimension_semantics=("arbitrary",),
        ),
    )(trow, tcol, tcol, m12)
    return out[0, 0], 0


def _reference(m1, m2, targets, margin=0.5):
    """Pure-JAX mirror of the PyTorch forward (validation only)."""
    maskf = (targets[:, None] == targets[None, :]).astype(jnp.float32)
    cnt = maskf.sum(axis=1, keepdims=True)
    cR = (maskf @ m1) / cnt
    cT = (maskf @ m2) / cnt
    c = (cR + cT) / 2.0

    def cdist(a, b):
        d2 = (jnp.sum(a * a, 1, keepdims=True)
              + jnp.sum(b * b, 1, keepdims=True).T - 2.0 * (a @ b.T))
        return jnp.sqrt(jnp.maximum(d2, 1e-12))

    dist1, dist2 = cdist(cR, c), cdist(cT, c)
    dd1, dd2 = jnp.sqrt(dist1 + 1e-10), jnp.sqrt(dist2 + 1e-10)

    def closs(dist, dd):
        return jnp.mean(maskf * dist ** 2
                        + (1.0 - maskf) * jnp.maximum(margin - dd, 0.0) ** 2)

    return closs(dist1, dd1) + closs(dist2, dd2)


if __name__ == "__main__":
    n, feat_dim = 16, 32
    key = jax.random.PRNGKey(0)
    k1, k2, k3 = jax.random.split(key, 3)
    # small feature scale so BOTH the positive and the margin-hinge branches
    # are active in the test
    modal1 = 0.04 * jax.random.normal(k1, (n, feat_dim), dtype=jnp.float32)
    modal2 = 0.04 * jax.random.normal(k2, (n, feat_dim), dtype=jnp.float32)
    targets = jax.random.randint(k3, (n,), 0, 5, dtype=jnp.int32)

    # block_rows=8 -> grid=(2,): exercises the row-block pipeline + accumulator
    loss, zero = cross_modal_contrastive_loss6(modal1, modal2, targets,
                                               block_rows=8)
    loss = jax.block_until_ready(loss)

    with jax.default_matmul_precision("highest"):
        ref = jax.block_until_ready(_reference(modal1, modal2, targets))

    assert zero == 0
    assert jnp.allclose(loss, ref, rtol=1e-2, atol=1e-6), (loss, ref)
    print("KERNEL_OK")
</pallas_src>

<mosaic_0001>
module attributes {stable_mosaic.version = 11 : i64} {
  func.func @_cmc6_kernel(%arg0: i32, %arg1: memref<1x16xi32, #tpu.memory_space<vmem>>, %arg2: memref<8x1xi32, #tpu.memory_space<vmem>>, %arg3: memref<16x1xi32, #tpu.memory_space<vmem>>, %arg4: memref<16x64xf32, #tpu.memory_space<vmem>>, %arg5: memref<1x1xf32, #tpu.memory_space<smem>>, %arg6: memref<16x32xf32, #tpu.memory_space<vmem>>, %arg7: memref<16x32xf32, #tpu.memory_space<vmem>>, %arg8: memref<32x16xf32, #tpu.memory_space<vmem>>, %arg9: memref<1x16xf32, #tpu.memory_space<vmem>>, %arg10: memref<1x1xf32, #tpu.memory_space<smem>>) attributes {dimension_semantics = [#tpu.dimension_semantics<arbitrary>], iteration_bounds = array<i64: 2>, scalar_prefetch = 0 : i64, scratch_operands = 5 : i64, tpu.core_type = #tpu.core_type<tc>, window_params = [{pipeline_mode = #tpu.pipeline_mode<synchronous>, transform_indices = @transform_0, window_bounds = array<i64: 1, 16>}, {transform_indices = @transform_1, window_bounds = array<i64: 8, 1>}, {pipeline_mode = #tpu.pipeline_mode<synchronous>, transform_indices = @transform_2, window_bounds = array<i64: 16, 1>}, {pipeline_mode = #tpu.pipeline_mode<synchronous>, transform_indices = @transform_3, window_bounds = array<i64: 16, 64>}, {transform_indices = @transform_4, window_bounds = array<i64: 1, 1>}]} {
    %c0_i32 = arith.constant 0 : i32
    %0 = arith.cmpi eq, %arg0, %c0_i32 : i32
    %1 = arith.extui %0 : i1 to i32
    %c0_i32_0 = arith.constant 0 : i32
    %2 = arith.cmpi ne, %1, %c0_i32_0 : i32
    scf.if %2 {
      %c0_27 = arith.constant 0 : index
      %c0_28 = arith.constant 0 : index
      %61 = vector.load %arg1[%c0_27, %c0_28] : memref<1x16xi32, #tpu.memory_space<vmem>>, vector<1x16xi32>
      %c0_29 = arith.constant 0 : index
      %c0_30 = arith.constant 0 : index
      %62 = vector.load %arg3[%c0_29, %c0_30] : memref<16x1xi32, #tpu.memory_space<vmem>>, vector<16x1xi32>
      %63 = vector.broadcast %62 : vector<16x1xi32> to vector<16x16xi32>
      %64 = vector.broadcast %61 : vector<1x16xi32> to vector<16x16xi32>
      %65 = arith.cmpi eq, %63, %64 : vector<16x16xi32>
      %66 = arith.extui %65 : vector<16x16xi1> to vector<16x16xi32>
      %67 = arith.sitofp %66 : vector<16x16xi32> to vector<16x16xf32>
      %cst_31 = arith.constant dense<0.000000e+00> : vector<16xf32>
      %68 = vector.multi_reduction <add>, %67, %cst_31 [1] : vector<16x16xf32> to vector<16xf32>
      %69 = vector.shape_cast %68 : vector<16xf32> to vector<16x1xf32>
      %cst_32 = arith.constant 1.000000e+00 : f32
      %70 = vector.broadcast %cst_32 : f32 to vector<16x1xf32>
      %71 = arith.divf %70, %69 : vector<16x1xf32>
      %c0_33 = arith.constant 0 : index
      %c0_34 = arith.constant 0 : index
      %72 = vector.load %arg4[%c0_33, %c0_34] : memref<16x64xf32, #tpu.memory_space<vmem>>, vector<16x64xf32>
      %cst_35 = arith.constant dense<0.000000e+00> : vector<16x64xf32>
      %73 = tpu.matmul %67, %72, %cst_35 {dimension_numbers = #tpu.dot_dimension_numbers<[1], [0], [0], [1], [0, 0, 1, 1], [], []>} : vector<16x16xf32>, vector<16x64xf32>, vector<16x64xf32> -> vector<16x64xf32>
      %74 = vector.broadcast %71 : vector<16x1xf32> to vector<16x64xf32>
      %75 = arith.mulf %73, %74 : vector<16x64xf32>
      %76 = vector.extract_strided_slice %75 {offsets = [0, 0], sizes = [16, 32], strides = [1, 1]} : vector<16x64xf32> to vector<16x32xf32>
      %77 = vector.extract_strided_slice %75 {offsets = [0, 32], sizes = [16, 32], strides = [1, 1]} : vector<16x64xf32> to vector<16x32xf32>
      %c0_36 = arith.constant 0 : index
      %c0_37 = arith.constant 0 : index
      %78 = vector.load %arg6[%c0_36, %c0_37] : memref<16x32xf32, #tpu.memory_space<vmem>>, vector<16x32xf32>
      tpu.vector_store %arg6[%c0_36, %c0_37], %76 {strides = array<i32>} : memref<16x32xf32, #tpu.memory_space<vmem>>, vector<16x32xf32>,
      %c0_38 = arith.constant 0 : index
      %c0_39 = arith.constant 0 : index
      %79 = vector.load %arg7[%c0_38, %c0_39] : memref<16x32xf32, #tpu.memory_space<vmem>>, vector<16x32xf32>
      tpu.vector_store %arg7[%c0_38, %c0_39], %77 {strides = array<i32>} : memref<16x32xf32, #tpu.memory_space<vmem>>, vector<16x32xf32>,
      %80 = arith.addf %76, %77 : vector<16x32xf32>
      %cst_40 = arith.constant 5.000000e-01 : f32
      %81 = vector.broadcast %cst_40 : f32 to vector<16x32xf32>
      %82 = arith.mulf %80, %81 : vector<16x32xf32>
      %83 = tpu.transpose %82, [1, 0] : vector<16x32xf32> -> vector<32x16xf32>
      %c0_41 = arith.constant 0 : index
      %c0_42 = arith.constant 0 : index
      %84 = vector.load %arg8[%c0_41, %c0_42] : memref<32x16xf32, #tpu.memory_space<vmem>>, vector<32x16xf32>
      tpu.vector_store %arg8[%c0_41, %c0_42], %83 {strides = array<i32>} : memref<32x16xf32, #tpu.memory_space<vmem>>, vector<32x16xf32>,
      %85 = arith.mulf %83, %83 : vector<32x16xf32>
      %cst_43 = arith.constant dense<0.000000e+00> : vector<16xf32>
      %86 = vector.multi_reduction <add>, %85, %cst_43 [0] : vector<32x16xf32> to vector<16xf32>
      %87 = vector.shape_cast %86 : vector<16xf32> to vector<1x16xf32>
      %c0_44 = arith.constant 0 : index
      %c0_45 = arith.constant 0 : index
      %88 = vector.load %arg9[%c0_44, %c0_45] : memref<1x16xf32, #tpu.memory_space<vmem>>, vector<1x16xf32>
      tpu.vector_store %arg9[%c0_44, %c0_45], %87 {strides = array<i32>} : memref<1x16xf32, #tpu.memory_space<vmem>>, vector<1x16xf32>,
      %cst_46 = arith.constant 0.000000e+00 : f32
      %c0_47 = arith.constant 0 : index
      %c0_48 = arith.constant 0 : index
      %89 = memref.load %arg10[%c0_47, %c0_48] : memref<1x1xf32, #tpu.memory_space<smem>>
      memref.store %cst_46, %arg10[%c0_47, %c0_48] : memref<1x1xf32, #tpu.memory_space<smem>>
    } else {
    }
    %c8_i32 = arith.constant 8 : i32
    %3 = arith.muli %arg0, %c8_i32 : i32
    %4 = tpu.assume_multiple %3, 8 : i32
    %c0 = arith.constant 0 : index
    %c0_1 = arith.constant 0 : index
    %5 = vector.load %arg1[%c0, %c0_1] : memref<1x16xi32, #tpu.memory_space<vmem>>, vector<1x16xi32>
    %c0_2 = arith.constant 0 : index
    %c0_3 = arith.constant 0 : index
    %6 = vector.load %arg2[%c0_2, %c0_3] : memref<8x1xi32, #tpu.memory_space<vmem>>, vector<8x1xi32>
    %7 = vector.broadcast %6 : vector<8x1xi32> to vector<8x16xi32>
    %8 = vector.broadcast %5 : vector<1x16xi32> to vector<8x16xi32>
    %9 = arith.cmpi eq, %7, %8 : vector<8x16xi32>
    %10 = arith.extui %9 : vector<8x16xi1> to vector<8x16xi32>
    %11 = arith.sitofp %10 : vector<8x16xi32> to vector<8x16xf32>
    %12 = arith.index_cast %4 : i32 to index
    %c0_4 = arith.constant 0 : index
    %13 = vector.load %arg6[%12, %c0_4] : memref<16x32xf32, #tpu.memory_space<vmem>>, vector<8x32xf32>
    %14 = arith.index_cast %4 : i32 to index
    %c0_5 = arith.constant 0 : index
    %15 = vector.load %arg7[%14, %c0_5] : memref<16x32xf32, #tpu.memory_space<vmem>>, vector<8x32xf32>
    %16 = tpu.concatenate %13, %15 in 0 : vector<8x32xf32>, vector<8x32xf32> -> vector<16x32xf32>
    %17 = arith.mulf %16, %16 : vector<16x32xf32>
    %cst = arith.constant dense<0.000000e+00> : vector<16xf32>
    %18 = vector.multi_reduction <add>, %17, %cst [1] : vector<16x32xf32> to vector<16xf32>
    %19 = vector.shape_cast %18 : vector<16xf32> to vector<16x1xf32>
    %c0_6 = arith.constant 0 : index
    %c0_7 = arith.constant 0 : index
    %20 = vector.load %arg8[%c0_6, %c0_7] : memref<32x16xf32, #tpu.memory_space<vmem>>, vector<32x16xf32>
    %cst_8 = arith.constant dense<0.000000e+00> : vector<16x16xf32>
    %21 = tpu.matmul %16, %20, %cst_8 {dimension_numbers = #tpu.dot_dimension_numbers<[1], [0], [0], [1], [0, 0, 1, 1], [], []>} : vector<16x32xf32>, vector<32x16xf32>, vector<16x16xf32> -> vector<16x16xf32>
    %c0_9 = arith.constant 0 : index
    %c0_10 = arith.constant 0 : index
    %22 = vector.load %arg9[%c0_9, %c0_10] : memref<1x16xf32, #tpu.memory_space<vmem>>, vector<1x16xf32>
    %23 = vector.broadcast %19 : vector<16x1xf32> to vector<16x16xf32>
    %24 = vector.broadcast %22 : vector<1x16xf32> to vector<16x16xf32>
    %25 = arith.addf %23, %24 : vector<16x16xf32>
    %cst_11 = arith.constant 2.000000e+00 : f32
    %26 = vector.broadcast %cst_11 : f32 to vector<16x16xf32>
    %27 = arith.mulf %26, %21 : vector<16x16xf32>
    %28 = arith.subf %25, %27 : vector<16x16xf32>
    %cst_12 = arith.constant 9.99999996E-13 : f32
    %29 = vector.broadcast %cst_12 : f32 to vector<16x16xf32>
    %30 = arith.maximumf %28, %29 : vector<16x16xf32>
    %31 = math.sqrt %30 : vector<16x16xf32>
    %cst_13 = arith.constant 1.000000e-10 : f32
    %32 = vector.broadcast %cst_13 : f32 to vector<16x16xf32>
    %33 = arith.addf %31, %32 : vector<16x16xf32>
    %34 = math.sqrt %33 : vector<16x16xf32>
    %cst_14 = arith.constant 5.000000e-01 : f32
    %35 = vector.broadcast %cst_14 : f32 to vector<16x16xf32>
    %36 = arith.subf %35, %34 : vector<16x16xf32>
    %cst_15 = arith.constant 0.000000e+00 : f32
    %37 = vector.broadcast %cst_15 : f32 to vector<16x16xf32>
    %38 = arith.maximumf %36, %37 : vector<16x16xf32>
    %39 = arith.mulf %38, %38 : vector<16x16xf32>
    %40 = vector.extract_strided_slice %30 {offsets = [0, 0], sizes = [8, 16], strides = [1, 1]} : vector<16x16xf32> to vector<8x16xf32>
    %41 = vector.extract_strided_slice %30 {offsets = [8, 0], sizes = [8, 16], strides = [1, 1]} : vector<16x16xf32> to vector<8x16xf32>
    %42 = arith.addf %40, %41 : vector<8x16xf32>
    %43 = arith.mulf %11, %42 : vector<8x16xf32>
    %cst_16 = arith.constant 1.000000e+00 : f32
    %44 = vector.broadcast %cst_16 : f32 to vector<8x16xf32>
    %45 = arith.subf %44, %11 : vector<8x16xf32>
    %46 = vector.extract_strided_slice %39 {offsets = [0, 0], sizes = [8, 16], strides = [1, 1]} : vector<16x16xf32> to vector<8x16xf32>
    %47 = vector.extract_strided_slice %39 {offsets = [8, 0], sizes = [8, 16], strides = [1, 1]} : vector<16x16xf32> to vector<8x16xf32>
    %48 = arith.addf %46, %47 : vector<8x16xf32>
    %49 = arith.mulf %45, %48 : vector<8x16xf32>
    %50 = arith.addf %43, %49 : vector<8x16xf32>
    %51 = vector.shape_cast %50 : vector<8x16xf32> to vector<1x8x16xf32>
    %cst_17 = arith.constant dense<0.000000e+00> : vector<1xf32>
    %52 = vector.multi_reduction <add>, %51, %cst_17 [1, 2] : vector<1x8x16xf32> to vector<1xf32>
    %53 = vector.shape_cast %52 : vector<1xf32> to vector<1x1x1xf32>
    %54 = vector.extract %53[0, 0, 0] : f32 from vector<1x1x1xf32>
    %cst_18 = arith.constant 3.906250e-03 : f32
    %55 = arith.mulf %54, %cst_18 : f32
    %c0_19 = arith.constant 0 : index
    %c0_20 = arith.constant 0 : index
    %56 = memref.load %arg10[%c0_19, %c0_20] : memref<1x1xf32, #tpu.memory_space<smem>>
    %57 = arith.addf %56, %55 : f32
    %c0_21 = arith.constant 0 : index
    %c0_22 = arith.constant 0 : index
    %58 = memref.load %arg10[%c0_21, %c0_22] : memref<1x1xf32, #tpu.memory_space<smem>>
    memref.store %57, %arg10[%c0_21, %c0_22] : memref<1x1xf32, #tpu.memory_space<smem>>
    %c0_23 = arith.constant 0 : index
    %c0_24 = arith.constant 0 : index
    %59 = memref.load %arg10[%c0_23, %c0_24] : memref<1x1xf32, #tpu.memory_space<smem>>
    %c0_25 = arith.constant 0 : index
    %c0_26 = arith.constant 0 : index
    %60 = memref.load %arg5[%c0_25, %c0_26] : memref<1x1xf32, #tpu.memory_space<smem>>
    memref.store %59, %arg5[%c0_25, %c0_26] : memref<1x1xf32, #tpu.memory_space<smem>>
    return
  }
  func.func @transform_0(%arg0: i32) -> (i32, i32) {
    %c0_i32 = arith.constant 0 : i32
    %c0_i32_0 = arith.constant 0 : i32
    %c0_i32_1 = arith.constant 0 : i32
    return %c0_i32, %c0_i32_0 : i32, i32
  }
  func.func @transform_1(%arg0: i32) -> (i32, i32) {
    %c0_i32 = arith.constant 0 : i32
    %c0_i32_0 = arith.constant 0 : i32
    return %arg0, %c0_i32 : i32, i32
  }
  func.func @transform_2(%arg0: i32) -> (i32, i32) {
    %c0_i32 = arith.constant 0 : i32
    %c0_i32_0 = arith.constant 0 : i32
    %c0_i32_1 = arith.constant 0 : i32
    return %c0_i32, %c0_i32_0 : i32, i32
  }
  func.func @transform_3(%arg0: i32) -> (i32, i32) {
    %c0_i32 = arith.constant 0 : i32
    %c0_i32_0 = arith.constant 0 : i32
    %c0_i32_1 = arith.constant 0 : i32
    return %c0_i32, %c0_i32_0 : i32, i32
  }
  func.func @transform_4(%arg0: i32) -> (i32, i32) {
    %c0_i32 = arith.constant 0 : i32
    %c0_i32_0 = arith.constant 0 : i32
    %c0_i32_1 = arith.constant 0 : i32
    return %c0_i32, %c0_i32_0 : i32, i32
  }
}

</mosaic_0001>

<bundles_post_ra>
// kernel: tpu_custom_call.1
= control target key start
LH: loop header
LB: loop body
LE: loop exit
PB: predicated region body
PF: predicated region fallthrough
CT: control target
= control target key end

     0   :  { %9 = vsyncpa [#allocation8], 0  ;;  %s765_s15 = smov 0   ;;  %s835_s0 = inlined_call_operand.vmem [shape: s32[1,16], index: 0, kind: input, shape index: {}]   ;;  %s836_s1 = inlined_call_operand.vmem [shape: s32[16,1], index: 1, kind: input, shape index: {}]   ;;  %s837_s2 = inlined_call_operand.vmem [shape: s32[16,1], index: 2, kind: input, shape index: {}]   ;;  %s838_s3 = inlined_call_operand.vmem [shape: f32[16,64], index: 3, kind: input, shape index: {}]   ;;  %s839_s4 = inlined_call_operand.hbm [shape: f32[1,1], index: 4, kind: output, shape index: {}]  }
   0x1 LB: > { %s771_s16 = sadd.s32 4294967295, %s731_s15   ;;  %p613_p0 = scmp.ge.s32.totalorder %s731_s15, 1  ;;  %s731_s15 = sphi %s765_s15, %s15_s15  }
   0x2   : > { %p157_p1 = scmp.lt.s32.totalorder %s731_s15, 3 }
   0x4   : > { %p158_p2 = pnand %p613_p0, %p157_p1 }
   0x5   : > { %p177_p3 = scmp.lt.s32.totalorder (!%p158_p2), %s771_s16, 1  ;;  %p615_p4 = scmp.ne.s32.totalorder (!%p158_p2), %s771_s16, 0 }
   0x6   : > { %161 = sbr.rel (%p158_p2) target bundleno = 1134 (0x46e), region = 36 }
   0xd   : > { %s178_s17 = scalar_select %p177_p3, %s771_s16, 1 }
   0xe   : > { %184 = sbr.rel (%p615_p4) target bundleno = 643 (0x283), region = 40  ;;  %v186_v0 = vld [vmem:[%s837_s2] sm:$0xff] (!%p615_p4)  ;;  %v733_v1 = vmov (!%p615_p4), 0   ;;  %v216_v3 = vld [vmem:[%s838_s3 + $0x8] sm:$0xff] (!%p615_p4)  ;;  %vm204_vm0 = vcmask (!%p615_p4), 130048   ;;  %v734_v8 = vmov (!%p615_p4), 0.0  }
   0xf   : > { %s614_s18 = sshll.u32 %s178_s17, 3  ;;  %694 = vset.pattern.permute.xlu0 (!%p615_p4), %v733_v1  ;;  %v215_v2 = vld [vmem:[%s838_s3] sm:$0xff] (!%p615_p4)  ;;  %v187_v5 = vld [vmem:[%s837_s2 + $0x8] sm:$0xff] (!%p615_p4)  ;;  %vm300_vm3 = vcmask (!%p615_p4), 261120   ;;  %s735_s6 = smov (!%p615_p4), 96   ;;  %vm370_vm4 = vcmask (!%p615_p4), 122880  }
  0x10   : > { %s780_s21 = scalar_lea.vmem %s836_s1, %s614_s18  ;;  %189 = vperm.xlu0 (!%p615_p4), %694, %v186_v0   ;;  %v659_v4 = vpack.c.bf16 (!%p615_p4), %v216_v3, %v215_v2  ;;  %v616_v6 = vld [vmem:[%s835_s0] ss:$0 sm:$0xff] (!%p615_p4)  ;;  %s736_s7 = smov (!%p615_p4), 0.0  }
  0x11   : > { %373 = sst [smem:[#allocation6]] (!%p615_p4), %s736_s7 }
  0x12   : > { %660 = vmatprep.subr.bf16.mxu0 (!%p615_p4), %v659_v4 }
  0x13   : > { %662 = vmatpush3.bf16.msra.mxu0 (!%p615_p4), %v659_v4 }
  0x14   : > { %192 = vperm.xlu0 (!%p615_p4), %694, %v187_v5  }
  0x8f   : > { %v190_v7 = vpop.permute.xlu0 %189 }
  0x90   : > { %vm198_vm1 = vcmp.eq.s32.totalorder %v190_v7, %v616_v6 }
  0x91   : > { %v617_v9 = vsel %vm198_vm1, 1.0, %v734_v8 }
  0x92   : > { %645 = vmatprep.mubr.msk.f32.mxu0 %vm204_vm0, %v617_v9  ;;  %v205_v10 = vsel %vm204_vm0, %v617_v9, 0.0 }
  0x93   : > { %v193_v11 = vpop.permute.xlu0 %192  ;;  %206 = vadd.xlane.f32.xlu1 %v205_v10 }
  0x94   : > { %vm199_vm2 = vcmp.eq.s32.totalorder %v193_v11, %v616_v6 }
  0x95   : > { %v618_v12 = vsel %vm199_vm2, 1.0, %v734_v8 }
  0x96   : > { %646 = vmatmul.mubr.msk.f32.vlgmr.msra.gmra.mrb[0].mxu0 %vm204_vm0, %v618_v12  ;;  %v208_v13 = vsel %vm204_vm0, %v618_v12, 0.0 }
  0x97   : > { %209 = vadd.xlane.f32.xlu1 %v208_v13 }
 0x120   : > { %v207_v14 = vpop.xlane.xlu1 %206 }
 0x124   : > { %v210_v15 = vpop.xlane.xlu1 %209 }
 0x125   : > { %695 = vrcp.f32 %v210_v15 }
 0x126   : > { %697 = vrcp.f32 %v207_v14 }
 0x12f   : > { %v696_v16 = vpop.eup %695 }
 0x130   : > { %v698_v18 = vpop.eup %697 }
 0x169   : > { %v647_v17 = vpop.f32.mrb[0].mxu0 }
 0x16a   : > { %v299_v19 = vmul.f32 %v696_v16, %v647_v17  ;;  %v289_v20 = vpop.f32.mrb[1].mxu0 }
 0x16b   : > { %v298_v21 = vmul.f32 %v698_v18, %v289_v20 }
 0x16c   : > { %307 = vrot.lane.b32.xlu1 %v299_v19, %s735_s6  ;;  %302 = vst.msk [vmem:[#allocation2 + $0x8] sm:$0xff] %vm300_vm3, %v299_v19 }
 0x16d   : > { %305 = vrot.lane.b32.xlu0 %v298_v21, %s735_s6  ;;  %301 = vst.msk [vmem:[#allocation2] sm:$0xff] %vm300_vm3, %v298_v21 }
 0x1de   : > { %v308_v22 = vpop.permute.xlu1 %307 }
 0x1df   : > { %312 = vst.msk [vmem:[#allocation3 + $0x8] sm:$0xff] %vm300_vm3, %v308_v22  ;;  %v306_v23 = vpop.permute.xlu0 %305  ;;  %v314_v25 = vadd.f32 %v308_v22, %v299_v19 }
 0x1e0   : > { %311 = vst.msk [vmem:[#allocation3] sm:$0xff] %vm300_vm3, %v306_v23  ;;  %v313_v24 = vadd.f32 %v306_v23, %v298_v21 }
 0x1e1   : > { %v316_v27 = vmul.f32 0.5, %v314_v25 }
 0x1e2   : > { %v315_v26 = vmul.f32 0.5, %v313_v24 }
 0x1e4   : > { %317 = vxpose.xlu0.b32.start [1/2] (short) (narrow) %v315_v26, 32 }
 0x1e8   : > { %318 = vxpose.xlu0.b32.end [2/2] (short) (narrow) %v316_v27, 32 }
 0x264   : > { %v333_v28 = vpop.trf.xlu0 }
 0x265   : > { %349 = vst.msk [vmem:[#allocation4] sm:$0xff] %vm204_vm0, %v333_v28  ;;  %v353_v31 = vmul.f32 %v333_v28, %v333_v28 }
 0x267   : > { %v357_v35 = vsel %vm204_vm0, %v353_v31, 0.0 }
 0x268   : > { %v334_v29 = vpop.trf.xlu0 }
 0x269   : > { %350 = vst.msk [vmem:[#allocation4 + $0x8] sm:$0xff] %vm204_vm0, %v334_v29  ;;  %v354_v30 = vmul.f32 %v334_v29, %v334_v29 }
 0x26b   : > { %v358_v33 = vsel %vm204_vm0, %v354_v30, 0.0 }
 0x26c   : > { %v335_v32 = vpop.trf.xlu0  ;;  %v359_v37 = vadd.f32 %v358_v33, %v357_v35 }
 0x26d   : > { %351 = vst.msk [vmem:[#allocation4 + $0x10] sm:$0xff] %vm204_vm0, %v335_v32  ;;  %v355_v34 = vmul.f32 %v335_v32, %v335_v32 }
 0x26f   : > { %v360_v36 = vsel %vm204_vm0, %v355_v34, 0.0 }
 0x270   : > { %v336_v38 = vpop.trf.xlu0  ;;  %v361_v40 = vadd.f32 %v360_v36, %v359_v37 }
 0x271   : > { %352 = vst.msk [vmem:[#allocation4 + $0x18] sm:$0xff] %vm204_vm0, %v336_v38  ;;  %v356_v39 = vmul.f32 %v336_v38, %v336_v38 }
 0x273   : > { %v362_v41 = vsel %vm204_vm0, %v356_v39, 0.0 }
 0x274   : > { %v363_v42 = vadd.f32 %v362_v41, %v361_v40 }
 0x276   : > { %v364_v43 = vrot.slane %v363_v42, 4 }
 0x278   : > { %v365_v44 = vadd.f32 %v364_v43, %v363_v42 }
 0x27a   : > { %v366_v45 = vrot.slane %v365_v44, 2 }
 0x27c   : > { %v367_v46 = vadd.f32 %v366_v45, %v365_v44 }
 0x27e   : > { %v368_v47 = vrot.slane %v367_v46, 1 }
 0x280   : > { %v369_v48 = vadd.f32 %v368_v47, %v367_v46 }
 0x282   : > { %371 = vst.msk [vmem:[#allocation5] sm:$0x1] %vm370_vm4, %v369_v48 }
 0x283 PF: > { %v400_v49 = vld [vmem:[#allocation4] sm:$0xff]  ;;  %v401_v50 = vld [vmem:[#allocation4 + $0x8] sm:$0xff]  ;;  %v402_v51 = vld [vmem:[#allocation4 + $0x10] sm:$0xff]  ;;  %s621_s8 = sshll.u32 %s771_s16, 3  ;;  %vm393_vm5 = vcmask 261120   ;;  %v737_v54 = vmov 0  }
 0x284   : > { %v663_v52 = vpack.c.bf16 %v401_v50, %v400_v49  ;;  %v403_v53 = vld [vmem:[#allocation4 + $0x18] sm:$0xff]  ;;  %699 = vset.pattern.permute.xlu1 %v737_v54  ;;  %v376_v55 = vld [vmem:[%s780_s21] sm:$0xff]  ;;  %700 = vset.pattern.permute.xlu0 %v737_v54  ;;  %s387_s9 = scalar_lea.vmem [#allocation2], %s621_s8  ;;  %s389_s10 = scalar_lea.vmem [#allocation3], %s621_s8  ;;  %v738_v41 = vmov 0.0   ;;  %vm542_vm15 = vcmask 130048  }
 0x285   : > { %v667_v56 = vpack.c.bf16 %v403_v53, %v402_v51  ;;  %v388_v57 = vld [vmem:[%s387_s9] sm:$0xff]  ;;  %378 = vperm.xlu1 %699, %v376_v55   ;;  %s554_s13 = sld [smem:[#allocation6]]  ;;  %p677_p5 = scmp.eq.s32.totalorder %s771_s16, 1 }
 0x286   : > { %v390_v58 = vld [vmem:[%s389_s10] sm:$0xff]  ;;  %664 = vmatprep.subr.bf16.mxu0 %v663_v52  ;;  %v391_v59 = vmul.f32 %v388_v57, %v388_v57  ;;  %656 = vmatprep.mubr.msk.f32.mxu0 %vm393_vm5, %v388_v57  ;;  %s709_s21 = scalar_lea.hbm %s839_s4, 16 }
 0x287   : > { %v392_v60 = vmul.f32 %v390_v58, %v390_v58  ;;  %666 = vmatpush3.bf16.msra.mxu0 %v663_v52  ;;  %v622_v31 = vld [vmem:[%s835_s0] ss:$0 sm:$0xff]  ;;  %p710_p6 = scmp.ne.s32.totalorder %s839_s4, %s709_s21  ;;  %p715_p9 = scmp.lt.u32.totalorder %s709_s21, %s839_s4 }
 0x288   : > { %668 = vmatprep.subr.bf16.mxu0 %v667_v56  ;;  %v394_v61 = vsel %vm393_vm5, %v391_v59, 0.0 }
 0x289   : > { %395 = vadd.xlane.f32.xlu0 %v394_v61  ;;  %v397_v62 = vsel %vm393_vm5, %v392_v60, 0.0  ;;  %v626_v1 = vld [vmem:[#allocation5] ss:$0 sm:$0xff]  ;;  %p711_p7 = pnand %p710_p6, %p677_p5 }
 0x28b   : > { %670 = vmatpush3.bf16.msra.mxu0 %v667_v56  ;;  %p712_p8 = pneg %p711_p7 }
 0x28d   : > { %398 = vadd.xlane.f32.xlu0 %v397_v62  ;;  %p717_p10 = pnand %p715_p9, %p712_p8 }
 0x28e   : > { %657 = vmatmul.mubr.msk.f32.vlgmr.msra.gmra.mrb[0].mxu0 %vm393_vm5, %v390_v58 }
 0x304   : > { %v379_v30 = vpop.permute.xlu1 %378 }
 0x305   : > { %vm384_vm14 = vcmp.eq.s32.totalorder %v379_v30, %v622_v31 }
 0x306   : > { %v623_v42 = vsel %vm384_vm14, 1.0, %v738_v41 }
 0x307   : > { %v538_v44 = vsub.f32 1.0, %v623_v42 }
 0x316   : > { %v396_v63 = vpop.xlane.xlu0 %395 }
 0x317   : > { %v492_v6 = vadd.f32 %v626_v1, %v396_v63 }
 0x31a   : > { %v399_v0 = vpop.xlane.xlu0 %398 }
 0x31b   : > { %v493_v2 = vadd.f32 %v626_v1, %v399_v0 }
 0x361   : > { %v658_v3 = vpop.f32.mrb[0].mxu0 }
 0x362   : > { %v495_v4 = vmul.f32 2.0, %v658_v3  ;;  %v476_v5 = vpop.f32.mrb[1].mxu0 }
 0x363   : > { %v494_v7 = vmul.f32 2.0, %v476_v5 }
 0x364   : > { %v497_v8 = vsub.f32 %v493_v2, %v495_v4 }
 0x365   : > { %v496_v9 = vsub.f32 %v492_v6, %v494_v7 }
 0x366   : > { %v499_v10 = vmax.f32 %v497_v8, 1e-12 }
 0x367   : > { %v498_v11 = vmax.f32 %v496_v9, 1e-12 }
 0x368   : > { %701 = vrsqrt.f32 %v499_v10  ;;  %vm509_vm6 = vcmp.eq.f32.partialorder %v499_v10, inf  ;;  %v512_v16 = vand.u32 2147483648, %v499_v10  ;;  %vm511_vm7 = vcmp.eq.f32.partialorder %v499_v10, 0.0 }
 0x369   : > { %703 = vrsqrt.f32 %v498_v11  ;;  %v536_v12 = vadd.f32 %v499_v10, %v498_v11  ;;  %vm502_vm8 = vcmp.eq.f32.partialorder %v498_v11, inf  ;;  %v505_v19 = vand.u32 2147483648, %v498_v11 }
 0x36a   : > { %vm504_vm9 = vcmp.eq.f32.partialorder %v498_v11, 0.0 }
 0x36b   : > { %v537_v47 = vmul.f32 %v623_v42, %v536_v12 }
 0x372   : > { %v702_v13 = vpop.eup %701 }
 0x373   : > { %v704_v14 = vpop.eup %703  ;;  %v508_v15 = vmul.f32 %v702_v13, %v499_v10 }
 0x374   : > { %v501_v17 = vmul.f32 %v704_v14, %v498_v11 }
 0x375   : > { %v510_v18 = vsel %vm509_vm6, %v499_v10, %v508_v15 }
 0x376   : > { %v513_v20 = vsel %vm511_vm7, %v512_v16, %v510_v18  ;;  %v503_v21 = vsel %vm502_vm8, %v498_v11, %v501_v17 }
 0x377   : > { %v506_v22 = vsel %vm504_vm9, %v505_v19, %v503_v21  ;;  %v515_v23 = vadd.f32 1e-10, %v513_v20 }
 0x378   : > { %v514_v24 = vadd.f32 1e-10, %v506_v22 }
 0x379   : > { %705 = vrsqrt.f32 %v515_v23  ;;  %vm525_vm10 = vcmp.eq.f32.partialorder %v515_v23, inf  ;;  %v528_v29 = vand.u32 2147483648, %v515_v23  ;;  %vm527_vm12 = vcmp.eq.f32.partialorder %v515_v23, 0.0 }
 0x37a   : > { %707 = vrsqrt.f32 %v514_v24  ;;  %vm518_vm11 = vcmp.eq.f32.partialorder %v514_v24, inf  ;;  %v521_v32 = vand.u32 2147483648, %v514_v24  ;;  %vm520_vm13 = vcmp.eq.f32.partialorder %v514_v24, 0.0 }
 0x383   : > { %v706_v25 = vpop.eup %705 }
 0x384   : > { %v708_v26 = vpop.eup %707  ;;  %v524_v27 = vmul.f32 %v706_v25, %v515_v23 }
 0x385   : > { %v517_v28 = vmul.f32 %v708_v26, %v514_v24 }
 0x386   : > { %v526_v33 = vsel %vm525_vm10, %v515_v23, %v524_v27 }
 0x387   : > { %v519_v34 = vsel %vm518_vm11, %v514_v24, %v517_v28  ;;  %v529_v35 = vsel %vm527_vm12, %v528_v29, %v526_v33 }
 0x388   : > { %v522_v36 = vsel %vm520_vm13, %v521_v32, %v519_v34  ;;  %v531_v37 = vsub.f32 0.5, %v529_v35 }
 0x389   : > { %v530_v38 = vsub.f32 0.5, %v522_v36 }
 0x38a   : > { %v533_v39 = vmax.f32 %v531_v37, 0.0 }
 0x38b   : > { %v532_v40 = vmax.f32 %v530_v38, 0.0 }
 0x38c   : > { %v535_v43 = vmul.f32 %v533_v39, %v533_v39 }
 0x38d   : > { %v534_v45 = vmul.f32 %v532_v40, %v532_v40 }
 0x38f   : > { %v539_v46 = vadd.f32 %v535_v43, %v534_v45 }
 0x391   : > { %v540_v48 = vmul.f32 %v539_v46, %v538_v44 }
 0x393   : > { %v541_v49 = vadd.f32 %v540_v48, %v537_v47 }
 0x395   : > { %v543_v50 = vsel %vm542_vm15, %v541_v49, 0.0 }
 0x396   : > { %544 = vadd.xlane.f32.xlu1 %v543_v50 }
 0x423   : > { %v545_v51 = vpop.xlane.xlu1 %544 }
 0x424   : > { %v546_v52 = vrot.slane %v545_v51, 4 }
 0x426   : > { %v547_v53 = vadd.f32 %v546_v52, %v545_v51 }
 0x428   : > { %v548_v54 = vrot.slane %v547_v53, 2 }
 0x42a   : > { %v549_v55 = vadd.f32 %v548_v54, %v547_v53 }
 0x42c   : > { %v550_v56 = vrot.slane %v549_v55, 1 }
 0x42e   : > { %v551_v57 = vadd.f32 %v550_v56, %v549_v55 }
 0x430   : > { %671 = vpush %v551_v57 }
 0x461   : > { %s672_s14 = spop %671 }
 0x462   : > { %s553_s17 = smul.f32 0.00390625, %s672_s14 }
 0x464   : > { %s555_s18 = sadd.f32 %s554_s13, %s553_s17 }
 0x466   : > { %557 = sst [smem:[#allocation6]] %s555_s18 }
 0x467   : > { %560 = sst [smem:[#allocation7]] %s555_s18 }
 0x468   : > { %720 = shalt.err (!%p717_p10)
}
 0x469   : > { %s739_s26 = smov [#allocation7]  }
 0x46a   : > { %674 = dma.smem_to_hbm (%p677_p5), %s739_s26, 16, %s839_s4, [#allocation8]  }
 0x46b   : > { %726 = dma.done.wait (%p677_p5), [#allocation8], 16  }
 0x46c   : > { %728 = vsyncadd (%p677_p5), [#allocation8], 4294967280 }
 0x46d   : > { %574 = sfence }
 0x46e PF: > { %s15_s15 = sadd.s32 1, %s731_s15  }
 0x46f   : > { %p12_p11 = scmp.ge.s32.totalorder %s15_s15, 4  }
 0x471   :  { %14 = sbr.rel (!%p12_p11) target bundleno = 1 (0x1), region = 72 }
 0x478   :  { %580 = vsyncpa [#allocation8], 1 }
 0x479   :  { %582 = vsyncpa [#allocation8 + $0x1], 1 }

</bundles_post_ra>
